<compile_context>
chip_gen: v5e
topology: v5e:2x2
jax: 0.10.0
libtpu: 0.0.40
codegen_flags: <defaults>
</compile_context>

<pallas_src>
import jax
import jax.numpy as jnp
from jax.experimental import pallas as pl
from jax.experimental.pallas import tpu as pltpu

# Only split the DMA across a parallel grid when the array is big enough that
# a second TensorCore's DMA path could actually help (v7x); below this a
# single whole-array DMA is already at roofline.
_CHUNK_MIN_BYTES = 2 * 1024 * 1024


def _whole_copy_kernel(x_hbm, o_hbm, sem):
    # Single direct HBM->HBM DMA of the entire array.  Zero VMEM footprint,
    # no vector loads/stores, no dtype casts (keeps v5e's single vst slot and
    # the VPU completely out of the picture -- purely HBM bound).
    cp = pltpu.make_async_copy(x_hbm, o_hbm, sem)
    cp.start()
    cp.wait()


def _make_chunked_copy_kernel(chunk_rows: int):
    # One DMA per grid step over a disjoint leading-axis slice.  With
    # dimension_semantics=("parallel",) the two steps shard across the two
    # TensorCores on v7x so both per-TC DMA paths are used.
    def kernel(x_hbm, o_hbm, sem):
        i = pl.program_id(0)
        start = pl.multiple_of(i * chunk_rows, chunk_rows)
        cp = pltpu.make_async_copy(
            x_hbm.at[pl.ds(start, chunk_rows)],
            o_hbm.at[pl.ds(start, chunk_rows)],
            sem,
        )
        cp.start()
        cp.wait()

    return kernel


def identity_pallas(x: jax.Array, *, donate: bool = False) -> jax.Array:
    """Identity copy of a tensor via direct HBM->HBM DMA (no VMEM staging).

    Contract notes:
      * If `donate=True`, or the array is empty / 0-d, the input array itself
        is returned (no kernel launch, possible aliasing).  An identity is a
        semantic no-op, so this is value-correct; callers needing a distinct
        materialized buffer should call with donate=False.
    """
    if x.size == 0 or x.ndim == 0:
        return x
    if donate:
        # An aliased in-place identity would spend 2N bytes of HBM bandwidth
        # rewriting the same values -- skip the launch entirely.
        return x

    itemsize = jnp.dtype(x.dtype).itemsize
    cost = pl.CostEstimate(
        flops=0, transcendentals=0, bytes_accessed=2 * x.size * itemsize
    )
    hbm_spec = pl.BlockSpec(memory_space=pl.ANY)

    num_chunks = 1
    if x.shape[0] % 2 == 0 and x.nbytes >= _CHUNK_MIN_BYTES:
        num_chunks = 2  # v7x has 2 TCs; more chunks buy nothing on v5e/v6e.

    if num_chunks == 1:
        return pl.pallas_call(
            _whole_copy_kernel,
            out_shape=jax.ShapeDtypeStruct(x.shape, x.dtype),
            in_specs=[hbm_spec],
            out_specs=hbm_spec,
            scratch_shapes=[pltpu.SemaphoreType.DMA(())],
            cost_estimate=cost,
        )(x)

    chunk_rows = x.shape[0] // num_chunks
    return pl.pallas_call(
        _make_chunked_copy_kernel(chunk_rows),
        out_shape=jax.ShapeDtypeStruct(x.shape, x.dtype),
        grid=(num_chunks,),
        in_specs=[hbm_spec],
        out_specs=hbm_spec,
        scratch_shapes=[pltpu.SemaphoreType.DMA(())],
        compiler_params=pltpu.CompilerParams(
            dimension_semantics=("parallel",),
        ),
        cost_estimate=cost,
    )(x)


class CNNAttentionDynamicSiteEmbeddingPallas:
    """JAX/Pallas equivalent of the (stub) PyTorch module.

    The reference __init__ defines no parameters and forward returns None, so
    no device work is launched here: the forward-pass semantics are exactly
    "accept anything, return None".
    """

    def __init__(self):
        # No parameters in the reference module's __init__.
        pass

    def __call__(self, *inputs):
        # Matches the PyTorch forward (`pass` -> None) with zero device work.
        return None


if __name__ == "__main__":
    key = jax.random.PRNGKey(0)

    # Small NCHW input consistent with a CNN-style module: single whole-array
    # HBM->HBM DMA path.
    x = jax.random.normal(key, (2, 4, 16, 16), dtype=jnp.float32)
    y = identity_pallas(x)
    jax.block_until_ready(y)
    assert y.shape == x.shape and y.dtype == x.dtype
    assert bool(jnp.array_equal(y, x)), "whole-array DMA identity mismatch"

    # Larger input (4 MiB) to exercise the 2-chunk parallel-grid DMA path
    # (dual-TC on v7x; identical result elsewhere).
    key_big = jax.random.fold_in(key, 1)
    big = jax.random.normal(key_big, (4, 256, 1024), dtype=jnp.float32)
    yb = identity_pallas(big)
    jax.block_until_ready(yb)
    assert bool(jnp.array_equal(yb, big)), "chunked DMA identity mismatch"

    # donate=True skips the launch entirely (aliased identity is wasted BW).
    yd = identity_pallas(x, donate=True)
    assert yd.shape == x.shape and yd.dtype == x.dtype

    # Module-equivalent wrapper must return None, matching the PyTorch stub,
    # and launches no device work.
    module = CNNAttentionDynamicSiteEmbeddingPallas()
    out = module(x)
    assert out is None

    print("KERNEL_OK")
</pallas_src>

<mosaic_0001>
module attributes {stable_mosaic.version = 11 : i64} {
  func.func @_whole_copy_kernel(%arg0: memref<2x4x16x16xf32, #tpu.memory_space<any>>, %arg1: memref<2x4x16x16xf32, #tpu.memory_space<any>>, %arg2: memref<!tpu.dma_semaphore, #tpu.memory_space<semaphore_mem>>) attributes {dimension_semantics = [], scalar_prefetch = 0 : i64, scratch_operands = 1 : i64, tpu.core_type = #tpu.core_type<tc>} {
    tpu.enqueue_dma source(%arg0 : memref<2x4x16x16xf32, #tpu.memory_space<any>>) target(%arg1 : memref<2x4x16x16xf32, #tpu.memory_space<any>>) target_semaphore(%arg2 : memref<!tpu.dma_semaphore, #tpu.memory_space<semaphore_mem>>)
    tpu.wait_dma2 semaphore(%arg2 : memref<!tpu.dma_semaphore, #tpu.memory_space<semaphore_mem>>) src(%arg0 : memref<2x4x16x16xf32, #tpu.memory_space<any>>) dst(%arg1 : memref<2x4x16x16xf32, #tpu.memory_space<any>>)
    return
  }
}

</mosaic_0001>

<bundles_post_ra>
// kernel: tpu_custom_call.1
= control target key start
LH: loop header
LB: loop body
LE: loop exit
PB: predicated region body
PF: predicated region fallthrough
CT: control target
= control target key end

     0   :  { %s34_s12 = smov [#allocation2]   ;;  %s35_s13 = smov [#allocation3]   ;;  %s53_s0 = inlined_call_operand.hbm [shape: f32[2,4,16,16], index: 0, kind: input, shape index: {}]   ;;  %s54_s1 = inlined_call_operand.hbm [shape: f32[2,4,16,16], index: 1, kind: output, shape index: {}]  }
   0x1   :  { %s10_s8 = sshll.u32 %s53_s0, 4  ;;  %s12_s11 = sshll.u32 %s54_s1, 4  ;;  %s11_s8 = int_to_ptr.hbm [resolvable:$true] %s10_s8  ;;  %s13_s11 = int_to_ptr.hbm [resolvable:$true] %s12_s11 }
   0x2   :  { %s36_s14 = smov 0  }
   0x3   :  { %16 = dma.general %s11_s8, 2048, %s13_s11, %s34_s12, %s35_s13, [#allocation4], %s36_s14, 0  }
   0x4   :  { %32 = dma.done.wait [#allocation2], 2048 }
   0x5   :  { %33 = vsyncadd [#allocation2], 4294965248 }
   0x6   :  { %22 = vsyncmov [#allocation2] }
   0x9   :  { %s23_s15 = vpop.sfrf %22 }
   0xa   :  { %p28_p0 = scmp.ne.s32.totalorder %s23_s15, 0 }
   0xc   :  { %27 = shalt.err (%p28_p0)  }

</bundles_post_ra>
